<compile_context>
chip_gen: v7x
topology: tpu7x:2x2x1
jax: 0.10.0
libtpu: 0.0.40
codegen_flags: <defaults>
</compile_context>

<pallas_src>
import jax
import jax.numpy as jnp
from jax.experimental import pallas as pl
from jax.experimental.pallas import tpu as pltpu

BN_EPS = 1e-5


def _stats_kernel(x_ref, gram_ref, xsum_ref):
    # x_ref: (1, Cin, T) tile of x (channel-major, spatial on lanes)
    # gram_ref: (Cin, Cin) accumulator of X @ X^T   (resident across grid)
    # xsum_ref: (Cin, 1)   accumulator of sum_x     (resident across grid)
    @pl.when(jnp.logical_and(pl.program_id(0) == 0, pl.program_id(1) == 0))
    def _():
        gram_ref[...] = jnp.zeros_like(gram_ref)
        xsum_ref[...] = jnp.zeros_like(xsum_ref)

    x = x_ref[0]                                            # (Cin, T)
    # Contract the big spatial axis on the MXU: (Cin,T)x(Cin,T) -> (Cin,Cin)
    gram_ref[...] += jax.lax.dot_general(
        x, x, (((1,), (1,)), ((), ())), preferred_element_type=jnp.float32)
    xsum_ref[...] += jnp.sum(x, axis=1, keepdims=True)      # (Cin, 1)


def _apply_kernel(x_ref, w_ref, scale_ref, shift_ref, o_ref):
    # x_ref: (1, Cin, T), w_ref: (Cout, Cin), scale/shift: (Cout, 1)
    # o_ref: (1, Cout, T)  -- lane-dense output (T is a multiple of 128)
    x = x_ref[0]                                            # (Cin, T)
    y = jnp.dot(w_ref[...], x, preferred_element_type=jnp.float32)  # (Cout, T)
    y = y * scale_ref[...] + shift_ref[...]                 # BN folded: one VPU pass
    o_ref[0] = jnp.maximum(y, 0.0).astype(o_ref.dtype)      # ReLU


def _pick_spatial_tile(hw, max_t=8192):
    """Largest multiple of 128 that divides hw (capped), else the full extent."""
    best = None
    c = 128
    while c <= min(hw, max_t):
        if hw % c == 0:
            best = c
        c += 128
    return best if best is not None else hw


def conv1x1_forward(x_nchw, w_oihw, gamma, beta, *, max_tile=8192):
    """x_nchw: (N, Cin, H, W) f32; w_oihw: (Cout, Cin, 1, 1); gamma/beta: (Cout,)."""
    N, Cin, H, W = x_nchw.shape
    Cout = w_oihw.shape[0]
    HW = H * W
    M = N * HW
    T = _pick_spatial_tile(HW, max_tile)
    grid = (N, HW // T)

    x3 = x_nchw.reshape(N, Cin, HW)          # pure reshape: stays channel-major
    w = w_oihw.reshape(Cout, Cin)

    # ---- pass 1: global BN statistics from x (tiny resident accumulators) ----
    gram, xsum = pl.pallas_call(
        _stats_kernel,
        out_shape=(jax.ShapeDtypeStruct((Cin, Cin), jnp.float32),
                   jax.ShapeDtypeStruct((Cin, 1), jnp.float32)),
        grid=grid,
        in_specs=[pl.BlockSpec((1, Cin, T), lambda n, j: (n, 0, j))],
        out_specs=(pl.BlockSpec((Cin, Cin), lambda n, j: (0, 0)),
                   pl.BlockSpec((Cin, 1), lambda n, j: (0, 0))),
        compiler_params=pltpu.CompilerParams(
            dimension_semantics=("arbitrary", "arbitrary")),
    )(x3)

    # Fold BN (training-mode batch stats, biased var) into per-channel scale/shift.
    # E[y] = W @ E[x];  E[y_o^2] = w_o^T (X X^T / M) w_o   (tiny O(Cout*Cin^2) math)
    mean_x = xsum[:, 0] / M                                  # (Cin,)
    mean_y = w @ mean_x                                      # (Cout,)
    ey2 = jnp.einsum('oc,cd,od->o', w, gram / M, w)          # (Cout,)
    var = jnp.maximum(ey2 - mean_y * mean_y, 0.0)            # biased variance
    inv_std = jax.lax.rsqrt(var + BN_EPS)
    scale_vec = gamma * inv_std                              # (Cout,)
    shift_vec = beta - mean_y * scale_vec                    # (Cout,)
    scale = scale_vec.reshape(Cout, 1)
    shift = shift_vec.reshape(Cout, 1)

    # ---- pass 2: y = W @ x, BN affine, ReLU — single streaming, pipelined pass ----
    out3 = pl.pallas_call(
        _apply_kernel,
        out_shape=jax.ShapeDtypeStruct((N, Cout, HW), jnp.float32),
        grid=grid,
        in_specs=[pl.BlockSpec((1, Cin, T), lambda n, j: (n, 0, j)),
                  pl.BlockSpec((Cout, Cin), lambda n, j: (0, 0)),
                  pl.BlockSpec((Cout, 1), lambda n, j: (0, 0)),
                  pl.BlockSpec((Cout, 1), lambda n, j: (0, 0))],
        out_specs=pl.BlockSpec((1, Cout, T), lambda n, j: (n, 0, j)),
        compiler_params=pltpu.CompilerParams(
            dimension_semantics=("parallel", "parallel")),
    )(x3, w, scale, shift)

    return out3.reshape(N, Cout, H, W)


def _reference(x_nchw, w_oihw, gamma, beta):
    # Pure-JAX reference (torch semantics: conv1x1 no bias -> BN train fwd -> ReLU).
    Cout, Cin = w_oihw.shape[0], w_oihw.shape[1]
    y = jnp.einsum('oc,nchw->nohw', w_oihw.reshape(Cout, Cin), x_nchw)
    mean = jnp.mean(y, axis=(0, 2, 3), keepdims=True)
    var = jnp.mean((y - mean) ** 2, axis=(0, 2, 3), keepdims=True)
    y = (y - mean) * jax.lax.rsqrt(var + BN_EPS)
    y = y * gamma.reshape(1, -1, 1, 1) + beta.reshape(1, -1, 1, 1)
    return jnp.maximum(y, 0.0)


if __name__ == "__main__":
    key = jax.random.PRNGKey(0)
    k_x, k_w = jax.random.split(key)

    N, in_chs, H, W = 2, 4, 16, 16
    out_chs = 8

    x = jax.random.normal(k_x, (N, in_chs, H, W), dtype=jnp.float32)

    # kaiming_normal_(mode='fan_in', nonlinearity='relu'): std = sqrt(2 / fan_in)
    fan_in = in_chs * 1 * 1
    w_std = jnp.sqrt(2.0 / fan_in)
    conv_w = w_std * jax.random.normal(k_w, (out_chs, in_chs, 1, 1), dtype=jnp.float32)

    # BatchNorm2d params as set by initialize_weights: weight=1, bias=0
    bn_gamma = jnp.ones((out_chs,), dtype=jnp.float32)
    bn_beta = jnp.zeros((out_chs,), dtype=jnp.float32)

    out = conv1x1_forward(x, conv_w, bn_gamma, bn_beta)
    out = jax.block_until_ready(out)

    ref = _reference(x, conv_w, bn_gamma, bn_beta)
    assert out.shape == (N, out_chs, H, W)
    err = float(jnp.max(jnp.abs(out - ref)))
    assert err < 1e-4, f"mismatch vs reference: {err}"

    print("KERNEL_OK")
</pallas_src>

<mosaic_0001>
module attributes {stable_mosaic.version = 11 : i64} {
  func.func @_stats_kernel(%arg0: i32, %arg1: i32, %arg2: memref<1x4x256xf32, #tpu.memory_space<vmem>>, %arg3: memref<4x4xf32, #tpu.memory_space<vmem>>, %arg4: memref<4x1xf32, #tpu.memory_space<vmem>>) attributes {dimension_semantics = [#tpu.dimension_semantics<arbitrary>, #tpu.dimension_semantics<arbitrary>], iteration_bounds = array<i64: 2, 1>, scalar_prefetch = 0 : i64, scratch_operands = 0 : i64, tpu.core_type = #tpu.core_type<tc>, window_params = [{transform_indices = @transform_0, window_bounds = array<i64: 1, 4, 256>}, {pipeline_mode = #tpu.pipeline_mode<synchronous>, transform_indices = @transform_1, window_bounds = array<i64: 4, 4>}, {pipeline_mode = #tpu.pipeline_mode<synchronous>, transform_indices = @transform_2, window_bounds = array<i64: 4, 1>}]} {
    %c0_i32 = arith.constant 0 : i32
    %0 = arith.cmpi eq, %arg0, %c0_i32 : i32
    %c0_i32_0 = arith.constant 0 : i32
    %1 = arith.cmpi eq, %arg1, %c0_i32_0 : i32
    %2 = arith.andi %0, %1 : i1
    %3 = arith.extui %2 : i1 to i32
    %c0_i32_1 = arith.constant 0 : i32
    %4 = arith.cmpi ne, %3, %c0_i32_1 : i32
    scf.if %4 {
      %cst_13 = arith.constant 0.000000e+00 : f32
      %16 = vector.broadcast %cst_13 : f32 to vector<4x4xf32>
      %c0_14 = arith.constant 0 : index
      %c0_15 = arith.constant 0 : index
      %17 = vector.load %arg3[%c0_14, %c0_15] : memref<4x4xf32, #tpu.memory_space<vmem>>, vector<4x4xf32>
      tpu.vector_store %arg3[%c0_14, %c0_15], %16 {strides = array<i32>} : memref<4x4xf32, #tpu.memory_space<vmem>>, vector<4x4xf32>,
      %cst_16 = arith.constant 0.000000e+00 : f32
      %18 = vector.broadcast %cst_16 : f32 to vector<4x1xf32>
      %c0_17 = arith.constant 0 : index
      %c0_18 = arith.constant 0 : index
      %19 = vector.load %arg4[%c0_17, %c0_18] : memref<4x1xf32, #tpu.memory_space<vmem>>, vector<4x1xf32>
      tpu.vector_store %arg4[%c0_17, %c0_18], %18 {strides = array<i32>} : memref<4x1xf32, #tpu.memory_space<vmem>>, vector<4x1xf32>,
    } else {
    }
    %c0 = arith.constant 0 : index
    %c0_2 = arith.constant 0 : index
    %c0_3 = arith.constant 0 : index
    %5 = vector.load %arg2[%c0, %c0_2, %c0_3] : memref<1x4x256xf32, #tpu.memory_space<vmem>>, vector<1x4x256xf32>
    %6 = vector.shape_cast %5 : vector<1x4x256xf32> to vector<4x256xf32>
    %c0_4 = arith.constant 0 : index
    %c0_5 = arith.constant 0 : index
    %7 = vector.load %arg3[%c0_4, %c0_5] : memref<4x4xf32, #tpu.memory_space<vmem>>, vector<4x4xf32>
    %cst = arith.constant dense<0.000000e+00> : vector<4x4xf32>
    %8 = tpu.matmul %6, %6, %cst {dimension_numbers = #tpu.dot_dimension_numbers<[1], [1], [0], [0], [0, 0, 1, 0], [], []>} : vector<4x256xf32>, vector<4x256xf32>, vector<4x4xf32> -> vector<4x4xf32>
    %9 = arith.addf %7, %8 : vector<4x4xf32>
    %c0_6 = arith.constant 0 : index
    %c0_7 = arith.constant 0 : index
    %10 = vector.load %arg3[%c0_6, %c0_7] : memref<4x4xf32, #tpu.memory_space<vmem>>, vector<4x4xf32>
    tpu.vector_store %arg3[%c0_6, %c0_7], %9 {strides = array<i32>} : memref<4x4xf32, #tpu.memory_space<vmem>>, vector<4x4xf32>,
    %c0_8 = arith.constant 0 : index
    %c0_9 = arith.constant 0 : index
    %11 = vector.load %arg4[%c0_8, %c0_9] : memref<4x1xf32, #tpu.memory_space<vmem>>, vector<4x1xf32>
    %cst_10 = arith.constant dense<0.000000e+00> : vector<4xf32>
    %12 = vector.multi_reduction <add>, %6, %cst_10 [1] : vector<4x256xf32> to vector<4xf32>
    %13 = vector.shape_cast %12 : vector<4xf32> to vector<4x1xf32>
    %14 = arith.addf %11, %13 : vector<4x1xf32>
    %c0_11 = arith.constant 0 : index
    %c0_12 = arith.constant 0 : index
    %15 = vector.load %arg4[%c0_11, %c0_12] : memref<4x1xf32, #tpu.memory_space<vmem>>, vector<4x1xf32>
    tpu.vector_store %arg4[%c0_11, %c0_12], %14 {strides = array<i32>} : memref<4x1xf32, #tpu.memory_space<vmem>>, vector<4x1xf32>,
    return
  }
  func.func @transform_0(%arg0: i32, %arg1: i32) -> (i32, i32, i32) {
    %c0_i32 = arith.constant 0 : i32
    %c0_i32_0 = arith.constant 0 : i32
    return %arg0, %c0_i32, %arg1 : i32, i32, i32
  }
  func.func @transform_1(%arg0: i32, %arg1: i32) -> (i32, i32) {
    %c0_i32 = arith.constant 0 : i32
    %c0_i32_0 = arith.constant 0 : i32
    %c0_i32_1 = arith.constant 0 : i32
    return %c0_i32, %c0_i32_0 : i32, i32
  }
  func.func @transform_2(%arg0: i32, %arg1: i32) -> (i32, i32) {
    %c0_i32 = arith.constant 0 : i32
    %c0_i32_0 = arith.constant 0 : i32
    %c0_i32_1 = arith.constant 0 : i32
    return %c0_i32, %c0_i32_0 : i32, i32
  }
}

</mosaic_0001>

<bundles_post_ra>
// kernel: tpu_custom_call.1
= control target key start
LH: loop header
LB: loop body
LE: loop exit
PB: predicated region body
PF: predicated region fallthrough
CT: control target
= control target key end

     0   :  { %8 = vsyncpa [#allocation3], 0  ;;  %s705_s0 = inlined_call_operand.hbm [shape: f32[2,4,256], index: 0, kind: input, shape index: {}]   ;;  %s706_s1 = inlined_call_operand.hbm [shape: f32[4,4], index: 1, kind: output, shape index: {0}]   ;;  %s707_s2 = inlined_call_operand.vmem [shape: f32[4,1], index: 2, kind: output, shape index: {1}]  }
   0x1   :  { %10 = vsyncpa [#allocation3 + $0x1], 0 }
   0x2   :  { %11 = vsyncpa [#allocation4], 0  ;;  %s545_s9 = smov 0   ;;  %s547_s10 = smov 0  }
   0x3   :  { %s549_s11 = smov 0   ;;  %s551_s12 = smov 0  }
   0x4   :  { %s553_s13 = smov 0   ;;  %s555_s14 = smov 0  }
   0x5 LB: > { %s336_s15 = sadd.s32 4294967295, %s525_s14   ;;  %s29_s16 = sadd.s32 1, %s521_s13  ;;  %s525_s14 = sphi %s555_s14, %s17_s14   ;;  %s521_s13 = sphi %s553_s13, %s718_s13   ;;  %s517_s12 = sphi %s551_s12, %s717_s12   ;;  %s513_s11 = sphi %s549_s11, %s716_s11   ;;  %s509_s10 = sphi %s547_s10, %s715_s10   ;;  %s505_s9 = sphi %s545_s9, %s714_s9  }
   0x6   : > { %p31_p0 = scmp.ge.s32.totalorder %s29_s16, 2  ;;  %s38_s17 = sadd.s32 1, %s513_s11 }
   0x7   : > { %p45_p1 = scmp.ne.s32.totalorder %s513_s11, %s509_s10  ;;  %p46_p2 = scmp.eq.s32.totalorder %s525_s14, 0 }
   0x8   : > { %s720_s16 = smov (%p31_p0, %s29_s16), 0  ;;  %p51_p4 = scmp.ne.s32.totalorder %s509_s10, %s505_s9 }
   0x9   : > { %p581_p3 = por %p46_p2, %p45_p1  ;;  %s33_s19 = ssub.s32 %s521_s13, %s720_s16 }
   0xa   : > { %p52_p5 = scmp.eq.s32.totalorder %s336_s15, 0  ;;  %p36_p6 = scmp.eq.s32.totalorder %s33_s19, 0 }
   0xb   : > { %p361_p8 = scmp.lt.s32.totalorder %s525_s14, 2  ;;  %s117_s22 = sand.u32 1, %s513_s11  }
   0xc   : > { %p590_p7 = por %p52_p5, %p51_p4  ;;  %s349_s23 = sshll.u32 %s521_s13, 7 }
   0xd   : > { %s596_s21 = scalar_select %p36_p6, %s513_s11, %s38_s17  }
   0xe   : > { %s339_s24 = sshll.u32 %s117_s22, 3  ;;  %s603_s27 = scalar_lea.hbm %s705_s0, %s349_s23 }
   0xf   : > { %s121_s28 = scalar_lea.vmem [#allocation2], %s339_s24  ;;  %p607_p9 = pnand %p361_p8, %p581_p3 }
  0x10   : > { %s131_s29 = sshll.u32 %s121_s28, 4  ;;  %s118_s3 = scalar_lea.sflag [#allocation3], %s117_s22  ;;  %s611_s29 = int_to_ptr.vmem [resolvable:$true] %s131_s29 }
  0x11   : > { %s415_s4 = scalar_lea.hbm %s603_s27, 128  ;;  %p417_p13 = pneg %p607_p9 }
  0x12   : > { %p416_p12 = scmp.ne.s32.totalorder %s603_s27, %s415_s4  ;;  %s420_s7 = scalar_lea.hbm %s705_s0, 256 }
  0x13   : > { %p421_p2 = scmp.lt.u32.totalorder %s603_s27, %s705_s0  ;;  %p422_p3 = scmp.lt.u32.totalorder %s420_s7, %s415_s4 }
  0x14   : > { %p418_p0 = pnand %p417_p13, %p416_p12  ;;  %p424_p5 = scmp.lt.u32.totalorder %s415_s4, %s603_s27 }
  0x15   : > { %p423_p4 = por %p422_p3, %p421_p2 }
  0x16   : > { %p419_p1 = pneg %p418_p0 }
  0x17   : > { %p425_p6 = por %p424_p5, %p423_p4 }
  0x19   : > { %p426_p8 = pnand %p425_p6, %p419_p1 }
  0x1b   : > { %429 = shalt.err (!%p426_p8)
}
  0x1c   : > { %s430_s17 = scalar_lea.vmem %s611_s29, 128  ;;  %s527_s18 = smov [#allocation2]  }
  0x1d   : > { %p431_p12 = scmp.ne.s32.totalorder %s611_s29, %s430_s17  ;;  %s435_s19 = sshll.u32 %s527_s18, 4  ;;  %s436_s19 = int_to_ptr.vmem [resolvable:$false] %s435_s19 }
  0x1e   : > { %s437_s22 = scalar_lea.vmem %s436_s19, 256  ;;  %p438_p11 = scmp.lt.s32.totalorder %s611_s29, %s436_s19 }
  0x1f   : > { %p433_p0 = pnand %p431_p12, %p417_p13  ;;  %p439_p2 = scmp.lt.s32.totalorder %s437_s22, %s430_s17 }
  0x21   : > { %p434_p10 = pneg %p433_p0  ;;  %p440_p3 = por %p439_p2, %p438_p11 }
  0x23   : > { %p441_p4 = pnand %p440_p3, %p434_p10 }
  0x25   : > { %444 = shalt.err (!%p441_p4)
}
  0x26   : > { %360 = dma.hbm_to_vmem [thread:$0]  (!%p607_p9), %s603_s27, 128, %s611_s29, %s118_s3  }
  0x27   : > { %p711_p1 = scmp.lt.s32.totalorder %s525_s14, 3  ;;  %p712_p5 = scmp.ge.s32.totalorder %s525_s14, 1 }
  0x29   : > { %p137_p13 = pnand %p712_p5, %p711_p1 }
  0x2a   : > { %s142_s23 = sand.u32 (!%p137_p13), 1, %s509_s10  }
  0x2b   : > { %140 = sbr.rel (%p137_p13) target bundleno = 296 (0x128), region = 24  ;;  %s343_s24 = sshll.u32 (!%p137_p13), %s142_s23, 3 }
  0x2c   : > { %s143_s25 = scalar_lea.sflag (!%p137_p13), [#allocation3], %s142_s23  ;;  %s146_s26 = scalar_lea.vmem (!%p137_p13), [#allocation2], %s343_s24 }
  0x32   : > { %496 = dma.done.wait (%p590_p7), %s143_s25, 128  }
  0x33   : > { %498 = vsyncadd (%p590_p7), %s143_s25, 4294967168  ;;  %p163_p10 = scmp.eq.s32.totalorder %s517_s12, 0 }
  0x34   : > { %vm169_vm0 = vcmask (%p163_p10), 27648   ;;  %vm171_vm1 = vcmask (%p163_p10), 3072   ;;  %v528_v0 = vmov (%p163_p10), 0.0  }
  0x35   : > { %168 = sbr.rel (!%p163_p10) target bundleno = 60 (0x3c), region = 32  ;;  %170 = vst.msk [vmem:[#allocation5] sm:$0xf] (%p163_p10), %vm169_vm0, %v528_v0 }
  0x36   : > { %172 = vst.msk [vmem:[%s707_s2] sm:$0xf] (%p163_p10), %vm171_vm1, %v528_v0 }
  0x3c PF: > { %v173_v1 = vld [vmem:[%s146_s26] sm:$0xff]  ;;  %vm252_vm2 = vcmask 1043456   ;;  %vm259_vm3 = vcmask 3072   ;;  %v174_v9 = vld [vmem:[#allocation5] sm:$0xf]  ;;  %s529_s3 = smov [#allocation5]  }
  0x3d   : > { %v176_v2 = vcombine.high %v173_v1, %v173_v1  ;;  %v253_v3 = vsel %vm252_vm2, %v173_v1, 0.0  ;;  %v251_v6 = vld [vmem:[%s707_s2] sm:$0xf]  ;;  %s268_s4 = sshll.u32 %s529_s3, 4  ;;  %vm249_vm4 = vcmask 27648   ;;  %p661_p7 = scmp.eq.s32.totalorder %s336_s15, 1  ;;  %s269_s4 = int_to_ptr.vmem [resolvable:$true] %s268_s4 }
  0x3e   : > { %s445_s6 = scalar_lea.vmem %s269_s4, 64  ;;  %p452_p8 = scmp.lt.s32.totalorder %s269_s4, %s269_s4 }
  0x3f   : > { %178 = vmatprep.subr.mxu0 %v176_v2  ;;  %242 = vmatprep.mubr.f32.mxu0 %v176_v2  ;;  %v254_v4 = vsel %vm252_vm2, %v176_v2, 0.0  ;;  %p446_p9 = scmp.ne.s32.totalorder %s269_s4, %s445_s6  ;;  %p453_p12 = scmp.lt.s32.totalorder %s445_s6, %s445_s6 }
  0x40   : > { %179 = vmatpush1.xpose.msra.mxu0 %v173_v1  ;;  %v255_v5 = vadd.f32 %v254_v4, %v253_v3 }
  0x41   : > { %p447_p11 = pnand %p446_p9, %p661_p7  ;;  %p454_p0 = por %p453_p12, %p452_p8 }
  0x42   : > { %256 = vadd.xlane.f32.xlu0 %v255_v5 }
  0x43   : > { %243 = vmatmul.mubr.f32.vlgmr.msra.gmra.mrb[0].mxu0 %v173_v1  ;;  %p448_p6 = pneg %p447_p11 }
  0x45   : > { %p455_p2 = pnand %p454_p0, %p448_p6 }
  0xcf   : > { %v257_v7 = vpop.xlane.xlu0 %256 }
  0xd0   : > { %v258_v8 = vadd.f32 %v257_v7, %v251_v6 }
  0xd2   : > { %260 = vst.msk [vmem:[%s707_s2] sm:$0xf] %vm259_vm3, %v258_v8 }
 0x116   : > { %v244_v10 = vpop.f32.mrb[0].mxu0 }
 0x117   : > { %v248_v11 = vadd.f32 %v244_v10, %v174_v9  ;;  %v246_v12 = vpop.f32.mrb[1].mxu0 }
 0x119   : > { %250 = vst.msk [vmem:[#allocation5] sm:$0xf] %vm249_vm4, %v248_v11 }
 0x11a   : > { %458 = shalt.err (!%p455_p2)
}
 0x11b   : > { %s459_s8 = scalar_lea.hbm %s706_s1, 64 }
 0x11c   : > { %p460_p3 = scmp.ne.s32.totalorder %s706_s1, %s459_s8  ;;  %p465_p5 = scmp.lt.u32.totalorder %s459_s8, %s706_s1 }
 0x11e   : > { %p461_p4 = pnand %p460_p3, %p661_p7 }
 0x120   : > { %p462_p1 = pneg %p461_p4 }
 0x122   : > { %p467_p13 = pnand %p465_p5, %p462_p1 }
 0x124   : > { %470 = shalt.err (!%p467_p13)
}
 0x125   : > { %354 = dma.vmem_to_hbm [thread:$0]  (%p661_p7), %s269_s4, 64, %s706_s1, [#allocation4]  }
 0x126   : > { %500 = dma.done.wait (%p661_p7), [#allocation4], 64  }
 0x127   : > { %502 = vsyncadd (%p661_p7), [#allocation4], 4294967232 }
 0x128 PF: > { %s17_s14 = sadd.s32 1, %s525_s14   ;;  %s714_s9 = smov %s509_s10 }
 0x129   : > { %p14_p10 = scmp.ge.s32.totalorder %s17_s14, 4   ;;  %s715_s10 = smov %s513_s11 }
 0x12a   : > { %s716_s11 = smov %s596_s21  ;;  %s717_s12 = smov %s521_s13 }
 0x12b   : > { %s718_s13 = smov %s720_s16  ;;  %16 = sbr.rel (!%p14_p10) target bundleno = 5 (0x5), region = 73 }
 0x132   :  { %287 = vsyncpa [#allocation3], 1 }
 0x133   :  { %289 = vsyncpa [#allocation3 + $0x1], 1 }
 0x134   :  { %290 = vsyncpa [#allocation4], 1 }
 0x135   :  { %292 = vsyncpa [#allocation4 + $0x1], 1 }

</bundles_post_ra>
